<compile_context>
chip_gen: v6e
topology: v6e:2x2x1
jax: 0.10.0
libtpu: 0.0.40
codegen_flags: <defaults>
</compile_context>

<pallas_src>
import functools

import jax
import jax.numpy as jnp
from jax import lax
from jax.experimental import pallas as pl
from jax.experimental.pallas import tpu as pltpu


_TILE_TARGET_BYTES = 2 * 1024 * 1024  # ~2 MiB per input tile (double-buffered)


def _round_down(x, m):
    return (x // m) * m


def _choose_tiles(nc, hw, itemsize):
    """Pick (tile_nc, tile_hw) obeying the (8,128)/full-dim rule and ~2MiB tiles."""
    sub = max(8, 32 // itemsize)                 # sublane packing: f32=8, bf16=16, i8=32
    target_elems = _TILE_TARGET_BYTES // itemsize
    if hw * sub <= target_elems:
        # Full spatial extent fits in one block; tile only over the NC axis.
        tile_hw = hw
        tile_nc = min(1024, max(sub, _round_down(target_elems // hw, sub)))
    else:
        # Very large spatial extent: tile both axes (HW is the trailing reduction axis).
        tile_nc = 8 * sub
        tile_hw = max(128, _round_down(target_elems // tile_nc, 128))
    if nc <= tile_nc:
        tile_nc = nc                              # "equal to full dim" is always legal
    return tile_nc, tile_hw


def _make_pool_kernel(hw_total, tile_hw, need_avg, need_max, mode):
    """Build the streaming-reduction kernel body for a given static config."""
    needs_mask = (hw_total % tile_hw) != 0
    inv_hw = 1.0 / float(hw_total)

    def kernel(x_ref, o_ref, sum_acc, max_acc):
        k = pl.program_id(1)

        @pl.when(k == 0)
        def _init():
            if need_avg:
                sum_acc[...] = jnp.zeros_like(sum_acc)
            if need_max:
                max_acc[...] = jnp.full_like(max_acc, -jnp.inf)

        # Keep native dtype through the DMA; upcast only for the reduction.
        x = x_ref[...].astype(jnp.float32)
        if needs_mask:
            col = lax.broadcasted_iota(jnp.int32, x.shape, 1)
            valid = (k * tile_hw + col) < hw_total
        if need_avg:
            xs = jnp.where(valid, x, 0.0) if needs_mask else x
            sum_acc[...] += jnp.sum(xs, axis=-1, keepdims=True)
        if need_max:
            xm = jnp.where(valid, x, -jnp.inf) if needs_mask else x
            max_acc[...] = jnp.maximum(max_acc[...],
                                       jnp.max(xm, axis=-1, keepdims=True))

        @pl.when(k == pl.num_programs(1) - 1)
        def _finalize():
            if mode in ('fast', 'avg'):
                res = sum_acc[...] * inv_hw
            elif mode == 'max':
                res = max_acc[...]
            elif mode == 'avgmax':
                res = 0.5 * (sum_acc[...] * inv_hw + max_acc[...])
            else:  # 'catavgmax' -> fused (tile_nc, 2) output block [avg | max]
                res = jnp.concatenate(
                    [sum_acc[...] * inv_hw, max_acc[...]], axis=-1)
            o_ref[...] = res.astype(o_ref.dtype)

    return kernel


@functools.partial(jax.jit, static_argnames=('hw', 'mode'))
def _global_pool_2d(x2, hw, mode):
    """x2: (NC, HW). Returns (NC, 1) pooled result, or (NC, 2) = [avg|max] for catavgmax."""
    nc = x2.shape[0]
    itemsize = jnp.dtype(x2.dtype).itemsize
    tile_nc, tile_hw = _choose_tiles(nc, hw, itemsize)

    need_avg = mode in ('fast', 'avg', 'avgmax', 'catavgmax')
    need_max = mode in ('max', 'avgmax', 'catavgmax')
    n_cols = 2 if mode == 'catavgmax' else 1

    grid = (pl.cdiv(nc, tile_nc), pl.cdiv(hw, tile_hw))
    kernel = _make_pool_kernel(hw, tile_hw, need_avg, need_max, mode)

    out = pl.pallas_call(
        kernel,
        out_shape=jax.ShapeDtypeStruct((nc, n_cols), x2.dtype),
        grid_spec=pltpu.PrefetchScalarGridSpec(
            num_scalar_prefetch=0,
            grid=grid,
            in_specs=[pl.BlockSpec((tile_nc, tile_hw), lambda i, k: (i, k))],
            out_specs=pl.BlockSpec((tile_nc, n_cols), lambda i, k: (i, 0)),
            scratch_shapes=[pltpu.VMEM((tile_nc, 1), jnp.float32),
                            pltpu.VMEM((tile_nc, 1), jnp.float32)]),
        compiler_params=pltpu.CompilerParams(
            dimension_semantics=("parallel", "arbitrary")),
    )(x2)
    return out


class SelectAdaptivePool2d:
    """Selectable global pooling layer (global pooling, output_size must be 1).

    Supported pool_type: '', 'fast', 'avg', 'max', 'avgmax', 'catavgmax'.
    """

    def __init__(self, output_size=1, pool_type='fast', flatten=False):
        self.pool_type = pool_type or ''
        self.flatten = flatten
        if self.pool_type == 'fast':
            assert output_size == 1
            self._fast_flatten = flatten   # FastAdaptiveAvgPool2d(flatten)
            self.flatten = False           # matches the PyTorch module behavior
        elif self.pool_type != '':
            # TODO(synk): general output_size > 1 adaptive pooling not implemented;
            # only global (output_size == 1) pooling is supported here.
            assert output_size == 1, "only output_size=1 supported"

    def is_identity(self):
        return self.pool_type == ''

    def feat_mult(self):
        return 2 if self.pool_type == 'catavgmax' else 1

    def __call__(self, x):
        # x: (N, C, H, W)
        if self.pool_type == '':
            out = x
            if self.flatten:
                out = out.reshape(out.shape[0], -1)
            return out

        n, c, h, w = x.shape
        hw = h * w
        x2 = x.reshape(n * c, hw)
        pooled = _global_pool_2d(x2, hw, self.pool_type)

        if self.pool_type == 'fast':
            # x.mean((2,3)) if flatten else x.mean((2,3), keepdim=True)
            if self._fast_flatten:
                return pooled.reshape(n, c)
            return pooled.reshape(n, c, 1, 1)

        if self.pool_type in ('avg', 'max', 'avgmax'):
            out = pooled.reshape(n, c, 1, 1)
        elif self.pool_type == 'catavgmax':
            avg = pooled[:, 0].reshape(n, c, 1, 1)
            mx = pooled[:, 1].reshape(n, c, 1, 1)
            out = jnp.concatenate((avg, mx), axis=1)   # (N, 2C, 1, 1)
        else:
            raise AssertionError('Invalid pool type: %s' % self.pool_type)

        if self.flatten:
            out = out.reshape(out.shape[0], -1)
        return out


if __name__ == "__main__":
    key = jax.random.PRNGKey(0)
    x = jax.random.normal(key, (2, 4, 16, 16), dtype=jnp.float32)

    ref_avg = jnp.mean(x, axis=(2, 3), keepdims=True)
    ref_max = jnp.max(x, axis=(2, 3), keepdims=True)

    # Default module config: pool_type='fast', flatten=False -> (N, C, 1, 1)
    y = jax.block_until_ready(
        SelectAdaptivePool2d(output_size=1, pool_type='fast', flatten=False)(x))
    assert y.shape == (2, 4, 1, 1)
    assert jnp.allclose(y, ref_avg, atol=1e-5, rtol=1e-5)

    # fast + flatten -> (N, C)
    y_ff = jax.block_until_ready(
        SelectAdaptivePool2d(pool_type='fast', flatten=True)(x))
    assert y_ff.shape == (2, 4)
    assert jnp.allclose(y_ff, ref_avg.reshape(2, 4), atol=1e-5, rtol=1e-5)

    y_a = jax.block_until_ready(SelectAdaptivePool2d(pool_type='avg')(x))
    assert jnp.allclose(y_a, ref_avg, atol=1e-5, rtol=1e-5)

    y_m = jax.block_until_ready(SelectAdaptivePool2d(pool_type='max')(x))
    assert jnp.allclose(y_m, ref_max, atol=1e-5, rtol=1e-5)

    y_am = jax.block_until_ready(SelectAdaptivePool2d(pool_type='avgmax')(x))
    assert jnp.allclose(y_am, 0.5 * (ref_avg + ref_max), atol=1e-5, rtol=1e-5)

    y_cat = jax.block_until_ready(
        SelectAdaptivePool2d(pool_type='catavgmax', flatten=True)(x))
    ref_cat = jnp.concatenate((ref_avg, ref_max), axis=1).reshape(2, -1)
    assert y_cat.shape == (2, 8)
    assert jnp.allclose(y_cat, ref_cat, atol=1e-5, rtol=1e-5)

    # bf16 path: native-dtype DMA, f32 accumulation inside the kernel.
    x_bf = x.astype(jnp.bfloat16)
    y_bf = jax.block_until_ready(SelectAdaptivePool2d(pool_type='fast')(x_bf))
    ref_bf = jnp.mean(x_bf.astype(jnp.float32), axis=(2, 3),
                      keepdims=True).astype(jnp.bfloat16)
    assert jnp.allclose(y_bf.astype(jnp.float32), ref_bf.astype(jnp.float32),
                        atol=2e-2, rtol=2e-2)

    print("KERNEL_OK")
</pallas_src>

<mosaic_0001>
module attributes {stable_mosaic.version = 11 : i64} {
  func.func @kernel(%arg0: i32, %arg1: i32, %arg2: memref<8x256xf32, #tpu.memory_space<vmem>>, %arg3: memref<8x1xf32, #tpu.memory_space<vmem>>, %arg4: memref<8x1xf32, #tpu.memory_space<vmem>>, %arg5: memref<8x1xf32, #tpu.memory_space<vmem>>) attributes {dimension_semantics = [#tpu.dimension_semantics<parallel>, #tpu.dimension_semantics<arbitrary>], iteration_bounds = array<i64: 1, 1>, scalar_prefetch = 0 : i64, scratch_operands = 2 : i64, tpu.core_type = #tpu.core_type<tc>, window_params = [{transform_indices = @transform_0, window_bounds = array<i64: 8, 256>}, {transform_indices = @transform_1, window_bounds = array<i64: 8, 1>}]} {
    %c0_i32 = arith.constant 0 : i32
    %0 = arith.cmpi eq, %arg1, %c0_i32 : i32
    %1 = arith.extui %0 : i1 to i32
    %c0_i32_0 = arith.constant 0 : i32
    %2 = arith.cmpi ne, %1, %c0_i32_0 : i32
    scf.if %2 {
      %cst_8 = arith.constant 0.000000e+00 : f32
      %12 = vector.broadcast %cst_8 : f32 to vector<8x1xf32>
      %c0_9 = arith.constant 0 : index
      %c0_10 = arith.constant 0 : index
      %13 = vector.load %arg4[%c0_9, %c0_10] : memref<8x1xf32, #tpu.memory_space<vmem>>, vector<8x1xf32>
      tpu.vector_store %arg4[%c0_9, %c0_10], %12 {strides = array<i32>} : memref<8x1xf32, #tpu.memory_space<vmem>>, vector<8x1xf32>,
    } else {
    }
    %c0 = arith.constant 0 : index
    %c0_1 = arith.constant 0 : index
    %3 = vector.load %arg2[%c0, %c0_1] : memref<8x256xf32, #tpu.memory_space<vmem>>, vector<8x256xf32>
    %c0_2 = arith.constant 0 : index
    %c0_3 = arith.constant 0 : index
    %4 = vector.load %arg4[%c0_2, %c0_3] : memref<8x1xf32, #tpu.memory_space<vmem>>, vector<8x1xf32>
    %cst = arith.constant dense<0.000000e+00> : vector<8xf32>
    %5 = vector.multi_reduction <add>, %3, %cst [1] : vector<8x256xf32> to vector<8xf32>
    %6 = vector.shape_cast %5 : vector<8xf32> to vector<8x1xf32>
    %7 = arith.addf %4, %6 : vector<8x1xf32>
    %c0_4 = arith.constant 0 : index
    %c0_5 = arith.constant 0 : index
    %8 = vector.load %arg4[%c0_4, %c0_5] : memref<8x1xf32, #tpu.memory_space<vmem>>, vector<8x1xf32>
    tpu.vector_store %arg4[%c0_4, %c0_5], %7 {strides = array<i32>} : memref<8x1xf32, #tpu.memory_space<vmem>>, vector<8x1xf32>,
    %c0_i32_6 = arith.constant 0 : i32
    %9 = arith.cmpi eq, %arg1, %c0_i32_6 : i32
    %10 = arith.extui %9 : i1 to i32
    %c0_i32_7 = arith.constant 0 : i32
    %11 = arith.cmpi ne, %10, %c0_i32_7 : i32
    scf.if %11 {
      %c0_8 = arith.constant 0 : index
      %c0_9 = arith.constant 0 : index
      %12 = vector.load %arg4[%c0_8, %c0_9] : memref<8x1xf32, #tpu.memory_space<vmem>>, vector<8x1xf32>
      %cst_10 = arith.constant 3.906250e-03 : f32
      %13 = vector.broadcast %cst_10 : f32 to vector<8x1xf32>
      %14 = arith.mulf %12, %13 : vector<8x1xf32>
      %c0_11 = arith.constant 0 : index
      %c0_12 = arith.constant 0 : index
      %15 = vector.load %arg3[%c0_11, %c0_12] : memref<8x1xf32, #tpu.memory_space<vmem>>, vector<8x1xf32>
      tpu.vector_store %arg3[%c0_11, %c0_12], %14 {strides = array<i32>} : memref<8x1xf32, #tpu.memory_space<vmem>>, vector<8x1xf32>,
    } else {
    }
    return
  }
  func.func @transform_0(%arg0: i32, %arg1: i32) -> (i32, i32) {
    %c0_i32 = arith.constant 0 : i32
    return %arg0, %arg1 : i32, i32
  }
  func.func @transform_1(%arg0: i32, %arg1: i32) -> (i32, i32) {
    %c0_i32 = arith.constant 0 : i32
    %c0_i32_0 = arith.constant 0 : i32
    return %arg0, %c0_i32 : i32, i32
  }
}

</mosaic_0001>

<bundles_post_ra>
// kernel: _global_pool_2d.1
= control target key start
LH: loop header
LB: loop body
LE: loop exit
PB: predicated region body
PF: predicated region fallthrough
CT: control target
= control target key end

     0   :  { %6 = vsyncpa [#allocation5], 0  ;;  %s70_s6 = smov [#allocation4]   ;;  %s88_s0 = inlined_call_operand.hbm [shape: f32[8,256], index: 0, kind: input, shape index: {}]   ;;  %s89_s1 = inlined_call_operand.vmem [shape: f32[8,1], index: 1, kind: output, shape index: {}]  }
   0x1   :  { %s13_s7 = sshll.u32 %s70_s6, 4  ;;  %s14_s7 = int_to_ptr.vmem [resolvable:$true] %s13_s7 }
   0x2   :  { %s56_s8 = scalar_lea.vmem %s14_s7, 256  ;;  %p61_p1 = scmp.lt.s32.totalorder %s14_s7, %s14_s7 }
   0x3   :  { %p57_p0 = scmp.ne.s32.totalorder %s14_s7, %s56_s8  ;;  %p62_p2 = scmp.lt.s32.totalorder %s56_s8, %s56_s8 }
   0x5   :  { %p63_p3 = por %p62_p2, %p61_p1 }
   0x7   :  { %p64_p4 = pnand %p63_p3, %p57_p0 }
   0x9   :  { %67 = shalt.err (!%p64_p4)
}
   0xa   :  { %16 = dma.hbm_to_vmem [thread:$0]  %s88_s0, 256, %s14_s7, [#allocation5]  }
   0xb   :  { %68 = dma.done.wait [#allocation5], 256  }
   0xc   :  { %69 = vsyncadd [#allocation5], 4294967040  ;;  %vm24_vm0 = vcmask 7168   ;;  %v71_v0 = vmov 0.0   ;;  %v26_v1 = vld [vmem:[#allocation4] sm:$0xff]  ;;  %v27_v2 = vld [vmem:[#allocation4 + $0x8] sm:$0xff] }
   0xd   :  { %25 = vst.msk [vmem:[#allocation2] sm:$0xff] %vm24_vm0, %v71_v0  ;;  %v29_v3 = vadd.f32 %v27_v2, %v26_v1 }
   0xf   :  { %30 = vadd.xlane.f32.xlu0 %v29_v3 }
  0x14   :  { %v28_v4 = vld [vmem:[#allocation2] sm:$0xff] }
  0x98   :  { %v31_v5 = vpop.xlane.xlu0 %30 }
  0x99   :  { %v32_v6 = vadd.f32 %v31_v5, %v28_v4 }
  0x9b   :  { %34 = vst.msk [vmem:[#allocation2] sm:$0xff] %vm24_vm0, %v32_v6 }
  0xa2   :  { %v38_v7 = vld [vmem:[#allocation2] sm:$0xff] }
  0xa3   :  { %v39_v8 = vmul.f32 0.00390625, %v38_v7 }
  0xa5   :  { %40 = vst.msk [vmem:[%s89_s1] sm:$0xff] %vm24_vm0, %v39_v8 }
  0xa6   :  { %45 = vsyncpa [#allocation5], 1 }

</bundles_post_ra>
